<compile_context>
chip_gen: v5e
topology: v5e:2x2
jax: 0.10.0
libtpu: 0.0.40
codegen_flags: <defaults>
</compile_context>

<pallas_src>
import jax
import jax.numpy as jnp
from jax.experimental import pallas as pl
from jax.experimental.pallas import tpu as pltpu


# --------------------------------------------------------------------------- #
# Kernel bodies
# --------------------------------------------------------------------------- #
def _contrast_kernel_vpu(params_ref, r_ref, s_ref, out_ref):
    """Plain VPU reduction (used for f32 inputs; also the right choice on v5e).

    params_ref: (3,) f32 SMEM = [coef, prior*prior_weight, 1-prior_weight]
    r_ref:      (TB, 1, E) VMEM
    s_ref:      (TB, K, E) VMEM
    out_ref:    (TB, 1, 1) VMEM f32
    """
    coef = params_ref[0]
    mix_const = params_ref[1]     # prior * prior_weight
    mix_scale = params_ref[2]     # 1 - prior_weight

    diff = s_ref[...] - r_ref[...]                                   # (TB,K,E)
    # f32-accumulated lane reduce; avoids materialising an f32 copy of the
    # whole (TB,K,E) block when the inputs are sub-f32.
    sum_sq = jnp.sum(diff * diff, axis=-1, keepdims=True,
                     dtype=jnp.float32)                              # (TB,K,1)
    min_sq = jnp.min(sum_sq, axis=1, keepdims=True)                  # (TB,1,1)
    nominal_p = jnp.exp(-(min_sq * coef))                            # EUP
    out_ref[...] = mix_const + nominal_p * mix_scale


def _contrast_kernel_mxu(params_ref, r_ref, s_ref, out_ref):
    """MXU-reduce body (bf16 inputs on v6e / v7x).

    Sub/square stay in the packed input dtype; the E reduction is done as a
    ones-row batched matmul on the MXU with f32 accumulation, so the VALU only
    does ~2 ops/elem and the kernel stays on the HBM roofline on v7x.
    """
    coef = params_ref[0]
    mix_const = params_ref[1]
    mix_scale = params_ref[2]

    diff = s_ref[...] - r_ref[...]                                   # (TB,K,E)
    # NOTE: diff*diff rounds in the input dtype (bf16) before the f32 MXU
    # accumulation.  If bit-closeness to an f32 reference ever matters more
    # than VALU throughput, cast diff to f32 here instead.
    sq = diff * diff                                                 # (TB,K,E)
    tb, _, e = sq.shape
    ones_row = jnp.ones((tb, 1, e), dtype=sq.dtype)
    sum_sq = jnp.einsum("bje,bke->bjk", ones_row, sq,
                        preferred_element_type=jnp.float32)          # (TB,1,K)
    min_sq = jnp.min(sum_sq, axis=-1, keepdims=True)                 # (TB,1,1)
    nominal_p = jnp.exp(-(min_sq * coef))
    out_ref[...] = mix_const + nominal_p * mix_scale


# --------------------------------------------------------------------------- #
# Wrapper helpers
# --------------------------------------------------------------------------- #
def _chip_budgets():
    """(per-block VMEM target bytes, scoped VMEM limit bytes) per generation."""
    cap = None
    try:
        cap = getattr(pltpu.get_tpu_info(), "vmem_capacity_bytes", None)
    except Exception:
        cap = None
    if cap is not None and cap > (96 << 20):
        # v5e / v6e: 128 MiB physical VMEM -> larger blocks, longer DMAs.
        return 12 << 20, 64 << 20
    # v7x (64 MiB physical, 2 TCs) or unknown: stay conservative.
    return 8 << 20, 40 << 20


def _pick_block_b(B, K, E, itemsize, vmem_target_bytes):
    """Batch rows per block: biggest tile under the VMEM target, >=2 blocks
    when B is large enough for megacore to matter, never exceeding B."""
    per_row = (K + 1) * E * itemsize + 8          # s row + r row (+ output)
    tb = max(8, (int(vmem_target_bytes // per_row) // 8) * 8)
    if B >= 16:
        # Keep at least 2 grid steps so both TensorCores get work and the
        # software pipeline has something to overlap.
        half_rounded = ((((B + 1) // 2) + 7) // 8) * 8
        tb = min(tb, half_rounded)
    return max(1, min(tb, B))
    # TODO(synk): for very large K*E a single batch-row block may not fit VMEM;
    # add a second "arbitrary" grid axis over K with a running-min scratch
    # (+inf init) if that regime is ever hit.


# --------------------------------------------------------------------------- #
# Public wrapper
# --------------------------------------------------------------------------- #
def contrast_classifier_forward(r_emb, s_emb, factor, prior_logit,
                                prior_weight_logit, scale,
                                *, block_b=None, use_mxu_reduce=None,
                                vmem_target_bytes=None, vmem_limit_bytes=None):
    """Pallas forward. r_emb: (B,1,E), s_emb: (B,K,E) -> (B,1) float32."""
    B, one, E = r_emb.shape
    Bs, K, Es = s_emb.shape
    assert one == 1, "forward expects r_emb of shape (batch, 1, emb_size)"
    assert Bs == B and Es == E
    if r_emb.dtype != s_emb.dtype:
        r_emb = r_emb.astype(s_emb.dtype)

    if use_mxu_reduce is None:
        # MXU offload pays off where the bf16 stream would otherwise make the
        # VALU the bottleneck (v6e/v7x).  For f32 inputs the VPU reduce is
        # exact and cheap, and v5e is HBM-bound either way.
        use_mxu_reduce = s_emb.dtype == jnp.bfloat16

    tgt_default, lim_default = _chip_budgets()
    if vmem_target_bytes is None:
        vmem_target_bytes = tgt_default
    if vmem_limit_bytes is None:
        vmem_limit_bytes = lim_default

    itemsize = jnp.dtype(s_emb.dtype).itemsize
    if block_b is None:
        block_b = _pick_block_b(B, K, E, itemsize, vmem_target_bytes)
    block_b = int(block_b)
    n_blocks = pl.cdiv(B, block_b)      # uneven last block is fine: no padding

    # Fold scale^2 * factor^2 / E into one post-reduction scalar and do the
    # parameter sigmoids once here (not per element / per grid step).
    f = jnp.asarray(factor, jnp.float32).reshape(())
    coef = jnp.asarray(scale, jnp.float32) ** 2 * f * f / float(E)
    prior = jax.nn.sigmoid(jnp.asarray(prior_logit, jnp.float32).reshape(()))
    pw = jax.nn.sigmoid(jnp.asarray(prior_weight_logit, jnp.float32).reshape(()))
    params = jnp.stack([coef, prior * pw, 1.0 - pw]).astype(jnp.float32)  # (3,)

    kernel = _contrast_kernel_mxu if use_mxu_reduce else _contrast_kernel_vpu

    # TODO(synk): for production E < 128, a (K,E)->(K*E) lane-packed layout with
    # a block-diagonal ones matmul would restore full lane occupancy; left out
    # since typical embedding sizes are multiples of 128.
    grid_spec = pltpu.PrefetchScalarGridSpec(
        num_scalar_prefetch=1,
        grid=(n_blocks,),
        in_specs=[
            pl.BlockSpec((block_b, 1, E), lambda i, params: (i, 0, 0)),  # r
            pl.BlockSpec((block_b, K, E), lambda i, params: (i, 0, 0)),  # s
        ],
        out_specs=pl.BlockSpec((block_b, 1, 1), lambda i, params: (i, 0, 0)),
    )

    out = pl.pallas_call(
        kernel,
        out_shape=jax.ShapeDtypeStruct((B, 1, 1), jnp.float32),
        grid_spec=grid_spec,
        compiler_params=pltpu.CompilerParams(
            dimension_semantics=("parallel",),   # megacore-shard batch blocks
            vmem_limit_bytes=int(vmem_limit_bytes),
        ),
    )(params, r_emb, s_emb)

    return out.reshape(B, 1)


# --------------------------------------------------------------------------- #
# Pure-JAX reference (mirror of the PyTorch module) for verification
# --------------------------------------------------------------------------- #
def _reference_forward(r_emb, s_emb, factor, prior_logit,
                       prior_weight_logit, scale):
    diff = (s_emb[:, None, :, :] - r_emb[:, :, None, :]) * scale   # (B,1,K,E)
    mean_diff_sq = jnp.mean(diff ** 2, axis=3)                     # (B,1,K)
    s_mins = jnp.min(mean_diff_sq, axis=2)                         # (B,1)
    min_dist_sq = jnp.min(s_mins, axis=1, keepdims=True)           # (B,1)
    nominal_p = jnp.exp(-min_dist_sq * factor ** 2)
    prior = jax.nn.sigmoid(prior_logit)
    prior_weight = jax.nn.sigmoid(prior_weight_logit)
    return prior * prior_weight + nominal_p * (1 - prior_weight)


if __name__ == "__main__":
    batch, num_keys, emb_size = 2, 8, 32
    scale = 0.5

    key = jax.random.PRNGKey(0)
    k_r, k_s = jax.random.split(key)
    r_emb = jax.random.normal(k_r, (batch, 1, emb_size), dtype=jnp.float32)
    s_emb = jax.random.normal(k_s, (batch, num_keys, emb_size), dtype=jnp.float32)

    # Parameters exactly as in __init__ (deterministic, no checkpoint load):
    factor = jnp.ones((1, 1), dtype=jnp.float32)
    prior_logit = jnp.zeros((1, 1), dtype=jnp.float32)
    prior_weight_logit = jnp.array([[-5.0]], dtype=jnp.float32)

    # 1) f32 inputs -> VPU-reduce path, tight tolerance vs f32 reference.
    out_f32 = contrast_classifier_forward(r_emb, s_emb, factor, prior_logit,
                                          prior_weight_logit, scale)
    out_f32 = jax.block_until_ready(out_f32)
    ref_f32 = _reference_forward(r_emb, s_emb, factor, prior_logit,
                                 prior_weight_logit, scale)
    assert out_f32.shape == (batch, 1)
    assert jnp.allclose(out_f32, ref_f32, atol=1e-5, rtol=1e-5)

    # 2) bf16 inputs -> MXU-reduce path (elementwise stays bf16, f32 MXU acc).
    r_bf = r_emb.astype(jnp.bfloat16)
    s_bf = s_emb.astype(jnp.bfloat16)
    out_bf = contrast_classifier_forward(r_bf, s_bf, factor, prior_logit,
                                         prior_weight_logit, scale)
    out_bf = jax.block_until_ready(out_bf)
    ref_bf = _reference_forward(r_bf.astype(jnp.float32),
                                s_bf.astype(jnp.float32),
                                factor, prior_logit, prior_weight_logit, scale)
    assert out_bf.shape == (batch, 1)
    assert jnp.allclose(out_bf, ref_bf, atol=2e-2, rtol=2e-2)

    # 3) Ragged multi-block batch: exercises the no-padding uneven last block
    #    and the n_blocks >= 2 megacore split.
    B2 = 37
    r2 = jax.random.normal(jax.random.PRNGKey(1), (B2, 1, emb_size),
                           dtype=jnp.float32)
    s2 = jax.random.normal(jax.random.PRNGKey(2), (B2, num_keys, emb_size),
                           dtype=jnp.float32)
    out2 = contrast_classifier_forward(r2, s2, factor, prior_logit,
                                       prior_weight_logit, scale)
    out2 = jax.block_until_ready(out2)
    ref2 = _reference_forward(r2, s2, factor, prior_logit,
                              prior_weight_logit, scale)
    assert out2.shape == (B2, 1)
    assert jnp.allclose(out2, ref2, atol=1e-5, rtol=1e-5)

    print("KERNEL_OK")
</pallas_src>

<mosaic_0001>
module attributes {stable_mosaic.version = 11 : i64} {
  func.func @_contrast_kernel_vpu(%arg0: i32, %arg1: memref<3xf32, #tpu.memory_space<smem>>, %arg2: memref<2x1x32xf32, #tpu.memory_space<vmem>>, %arg3: memref<2x8x32xf32, #tpu.memory_space<vmem>>, %arg4: memref<2x1x1xf32, #tpu.memory_space<vmem>>) attributes {dimension_semantics = [#tpu.dimension_semantics<parallel>], iteration_bounds = array<i64: 1>, scalar_prefetch = 1 : i64, scratch_operands = 0 : i64, tpu.core_type = #tpu.core_type<tc>, window_params = [{transform_indices = @transform_0, window_bounds = array<i64: 2, 1, 32>}, {transform_indices = @transform_1, window_bounds = array<i64: 2, 8, 32>}, {transform_indices = @transform_2, window_bounds = array<i64: 2, 1, 1>}]} {
    %c0 = arith.constant 0 : index
    %0 = memref.load %arg1[%c0] : memref<3xf32, #tpu.memory_space<smem>>
    %c1 = arith.constant 1 : index
    %1 = memref.load %arg1[%c1] : memref<3xf32, #tpu.memory_space<smem>>
    %c2 = arith.constant 2 : index
    %2 = memref.load %arg1[%c2] : memref<3xf32, #tpu.memory_space<smem>>
    %c0_0 = arith.constant 0 : index
    %c0_1 = arith.constant 0 : index
    %c0_2 = arith.constant 0 : index
    %3 = vector.load %arg3[%c0_0, %c0_1, %c0_2] : memref<2x8x32xf32, #tpu.memory_space<vmem>>, vector<2x8x32xf32>
    %c0_3 = arith.constant 0 : index
    %c0_4 = arith.constant 0 : index
    %c0_5 = arith.constant 0 : index
    %4 = vector.load %arg2[%c0_3, %c0_4, %c0_5] : memref<2x1x32xf32, #tpu.memory_space<vmem>>, vector<2x1x32xf32>
    %5 = vector.broadcast %4 : vector<2x1x32xf32> to vector<2x8x32xf32>
    %6 = arith.subf %3, %5 : vector<2x8x32xf32>
    %7 = arith.mulf %6, %6 : vector<2x8x32xf32>
    %cst = arith.constant dense<0.000000e+00> : vector<2x8xf32>
    %8 = vector.multi_reduction <add>, %7, %cst [2] : vector<2x8x32xf32> to vector<2x8xf32>
    %9 = vector.shape_cast %8 : vector<2x8xf32> to vector<2x8x1xf32>
    %cst_6 = arith.constant dense<0x7F800000> : vector<2x1xf32>
    %10 = vector.multi_reduction <minimumf>, %9, %cst_6 [1] : vector<2x8x1xf32> to vector<2x1xf32>
    %11 = vector.shape_cast %10 : vector<2x1xf32> to vector<2x1x1xf32>
    %12 = vector.broadcast %0 : f32 to vector<2x1x1xf32>
    %13 = arith.mulf %11, %12 : vector<2x1x1xf32>
    %cst_7 = arith.constant 0.000000e+00 : f32
    %14 = vector.broadcast %cst_7 : f32 to vector<2x1x1xf32>
    %15 = arith.subf %14, %13 : vector<2x1x1xf32>
    %16 = math.exp %15 : vector<2x1x1xf32>
    %17 = vector.broadcast %2 : f32 to vector<2x1x1xf32>
    %18 = arith.mulf %16, %17 : vector<2x1x1xf32>
    %19 = vector.broadcast %1 : f32 to vector<2x1x1xf32>
    %20 = arith.addf %19, %18 : vector<2x1x1xf32>
    %c0_8 = arith.constant 0 : index
    %c0_9 = arith.constant 0 : index
    %c0_10 = arith.constant 0 : index
    %21 = vector.load %arg4[%c0_8, %c0_9, %c0_10] : memref<2x1x1xf32, #tpu.memory_space<vmem>>, vector<2x1x1xf32>
    tpu.vector_store %arg4[%c0_8, %c0_9, %c0_10], %20 {strides = array<i32>} : memref<2x1x1xf32, #tpu.memory_space<vmem>>, vector<2x1x1xf32>,
    return
  }
  func.func @transform_0(%arg0: i32, %arg1: memref<3xf32, #tpu.memory_space<smem>>) -> (i32, i32, i32) {
    %c0_i32 = arith.constant 0 : i32
    %c0_i32_0 = arith.constant 0 : i32
    %c0_i32_1 = arith.constant 0 : i32
    return %arg0, %c0_i32, %c0_i32_0 : i32, i32, i32
  }
  func.func @transform_1(%arg0: i32, %arg1: memref<3xf32, #tpu.memory_space<smem>>) -> (i32, i32, i32) {
    %c0_i32 = arith.constant 0 : i32
    %c0_i32_0 = arith.constant 0 : i32
    %c0_i32_1 = arith.constant 0 : i32
    return %arg0, %c0_i32, %c0_i32_0 : i32, i32, i32
  }
  func.func @transform_2(%arg0: i32, %arg1: memref<3xf32, #tpu.memory_space<smem>>) -> (i32, i32, i32) {
    %c0_i32 = arith.constant 0 : i32
    %c0_i32_0 = arith.constant 0 : i32
    %c0_i32_1 = arith.constant 0 : i32
    return %arg0, %c0_i32, %c0_i32_0 : i32, i32, i32
  }
}

</mosaic_0001>

<bundles_post_ra>
// kernel: tpu_custom_call.1
= control target key start
LH: loop header
LB: loop body
LE: loop exit
PB: predicated region body
PF: predicated region fallthrough
CT: control target
= control target key end

     0   :  { %s193_s15 = smov [#allocation3]   ;;  %s235_s0 = inlined_call_operand.hbm [shape: f32[3], index: 0, kind: input, shape index: {}]   ;;  %s236_s1 = inlined_call_operand.hbm [shape: f32[2,1,32], index: 1, kind: input, shape index: {}]   ;;  %s237_s2 = inlined_call_operand.hbm [shape: f32[2,8,32], index: 2, kind: input, shape index: {}]   ;;  %s238_s3 = inlined_call_operand.vmem [shape: f32[2,1,1], index: 3, kind: output, shape index: {}]  }
   0x1   :  { %s9_s14 = sshll.u32 %s235_s0, 4  ;;  %s10_s14 = int_to_ptr.hbm [resolvable:$true] %s9_s14 }
   0x2   :  { %12 = dma.hbm_to_smem %s10_s14, 16, %s193_s15, [#allocation2] }
   0x3   :  { %187 = dma.done.wait [#allocation2], 16 }
   0x4   :  { %188 = vsyncadd [#allocation2], 4294967280 }
   0x5   :  { %15 = sfence }
   0x6   :  { %16 = vsyncpa [#allocation5], 0  ;;  %s22_s18 = sshll.u32 %s236_s1, 4  ;;  %s23_s18 = int_to_ptr.hbm [resolvable:$true] %s22_s18 }
   0x7   :  { %17 = vsyncpa [#allocation7], 0  ;;  %s194_s19 = smov [#allocation4]   ;;  %s35_s0 = sshll.u32 %s237_s2, 4  ;;  %s36_s0 = int_to_ptr.hbm [resolvable:$true] %s35_s0 }
   0x8   :  { %s24_s20 = sshll.u32 %s194_s19, 4  ;;  %s195_s23 = smov 16   ;;  %s25_s20 = int_to_ptr.vmem [resolvable:$true] %s24_s20 }
   0x9   :  { %s196_s24 = smov 1   ;;  %s197_s25 = smov [#allocation6]  }
   0xa   :  { %30 = dma.hbm_to_vmem [thread:$0]  %s23_s18, 32, %s25_s20, [#allocation5], %s195_s23, %s195_s23, %s196_s24  }
   0xb   :  { %s37_s26 = sshll.u32 %s197_s25, 4  ;;  %s198_s27 = smov 128   ;;  %s38_s26 = int_to_ptr.vmem [resolvable:$true] %s37_s26 }
   0xc   :  { %s199_s28 = smov 8  }
   0xd   :  { %43 = dma.hbm_to_vmem [thread:$0]  %s36_s0, 256, %s38_s26, [#allocation7], %s198_s27, %s198_s27, %s199_s28  }
   0xe   :  { %189 = dma.done.wait [#allocation5], 32  }
   0xf   :  { %190 = vsyncadd [#allocation5], 4294967264 }
  0x10   :  { %191 = dma.done.wait [#allocation7], 256  }
  0x11   :  { %192 = vsyncadd [#allocation7], 4294967040  ;;  %v55_v0 = vld [vmem:[#allocation6] sm:$0xff]  ;;  %v121_v1 = vld [vmem:[#allocation4] ss:$0 sm:$0xff]  ;;  %vm69_vm0 = vcmask 261120  }
  0x12   :  { %v56_v2 = vld [vmem:[#allocation6 + $0x8] sm:$0xff]  ;;  %v122_v3 = vld [vmem:[#allocation4 + $0x1] ss:$0 sm:$0xff]  ;;  %v65_v4 = vsub.f32 %v55_v0, %v121_v1  ;;  %s52_s1 = sld [smem:[#allocation3]]  ;;  %vm103_vm1 = vcmask 0  }
  0x13   :  { %v66_v6 = vsub.f32 %v56_v2, %v122_v3  ;;  %s113_s2 = sld [smem:[#allocation3 + $0x2]] }
  0x14   :  { %v67_v5 = vmul.f32 %v65_v4, %v65_v4  ;;  %s112_s29 = sld [smem:[#allocation3 + $0x1]] }
  0x15   :  { %v68_v8 = vmul.f32 %v66_v6, %v66_v6 }
  0x16   :  { %v70_v7 = vsel %vm69_vm0, %v67_v5, 0.0 }
  0x17   :  { %71 = vadd.xlane.f32.xlu0 %v70_v7  ;;  %v73_v9 = vsel %vm69_vm0, %v68_v8, 0.0 }
  0x18   :  { %v88_v18 = vstv %s52_s1 }
  0x19   :  { %v97_v30 = vstv %s113_s2 }
  0x1a   :  { %v100_v33 = vstv %s112_s29 }
  0x1f   :  { %74 = vadd.xlane.f32.xlu0 %v73_v9 }
  0x8a   :  { %v72_v10 = vpop.xlane.xlu0 %71 }
  0x8b   :  { %v76_v11 = vrot.slane %v72_v10, 4 }
  0x8d   :  { %v77_v12 = vmin.f32 %v72_v10, %v76_v11 }
  0x8f   :  { %v78_v13 = vrot.slane %v77_v12, 2 }
  0x91   :  { %v79_v14 = vmin.f32 %v77_v12, %v78_v13 }
  0x92   :  { %v75_v15 = vpop.xlane.xlu0 %74 }
  0x93   :  { %v80_v16 = vrot.slane %v79_v14, 1  ;;  %v82_v17 = vrot.slane %v75_v15, 4 }
  0x95   :  { %v81_v19 = vmin.f32 %v79_v14, %v80_v16  ;;  %v83_v20 = vmin.f32 %v75_v15, %v82_v17 }
  0x97   :  { %v84_v21 = vrot.slane %v83_v20, 2  ;;  %v89_v22 = vmul.f32 %v88_v18, %v81_v19 }
  0x99   :  { %v85_v23 = vmin.f32 %v83_v20, %v84_v21  ;;  %v91_v24 = vsub.f32 0.0, %v89_v22 }
  0x9b   :  { %v86_v25 = vrot.slane %v85_v23, 1  ;;  %v93_v26 = vmul.f32 1.442695, %v91_v24 }
  0x9d   :  { %v87_v27 = vmin.f32 %v85_v23, %v86_v25  ;;  %123 = vpow2.f32 %v93_v26 }
  0x9f   :  { %v90_v28 = vmul.f32 %v88_v18, %v87_v27 }
  0xa1   :  { %v92_v29 = vsub.f32 0.0, %v90_v28 }
  0xa3   :  { %v124_v31 = vpop.eup %123  ;;  %v95_v32 = vmul.f32 1.442695, %v92_v29 }
  0xa4   :  { %v98_v34 = vmul.f32 %v124_v31, %v97_v30 }
  0xa5   :  { %125 = vpow2.f32 %v95_v32 }
  0xa6   :  { %v101_v35 = vadd.f32 %v100_v33, %v98_v34 }
  0xa8   :  { %104 = vst.msk [vmem:[%s238_s3] sm:$0x1] %vm103_vm1, %v101_v35 }
  0xab   :  { %v126_v36 = vpop.eup %125 }
  0xac   :  { %v99_v37 = vmul.f32 %v126_v36, %v97_v30 }
  0xae   :  { %v102_v38 = vadd.f32 %v100_v33, %v99_v37 }
  0xb0   :  { %105 = vst.msk [vmem:[%s238_s3 + $0x1] sm:$0x1] %vm103_vm1, %v102_v38 }
  0xb1   :  { %110 = vsyncpa [#allocation5], 1 }
  0xb2   :  { %111 = vsyncpa [#allocation7], 1 }

</bundles_post_ra>
